<compile_context>
chip_gen: v6e
topology: v6e:2x2x1
jax: 0.10.0
libtpu: 0.0.40
codegen_flags: <defaults>
</compile_context>

<pallas_src>
import functools

import jax
import jax.numpy as jnp
from jax.experimental import pallas as pl
from jax.experimental.pallas import tpu as pltpu


def _round_up(x, m):
    return ((x + m - 1) // m) * m


@functools.lru_cache(maxsize=1)
def _vmem_budget_bytes():
    """(scoped_vmem_limit, tiling_budget) in bytes, derived per TPU generation."""
    try:
        cap = int(pltpu.get_tpu_info().vmem_capacity_bytes)
    except Exception:  # unknown / mocked target: conservative default
        cap = 64 * 1024 * 1024
    # Leave headroom for compiler-internal scratch; never exceed 96 MiB.
    # v5e/v6e (128 MiB) -> 96 MiB limit; v7x (64 MiB per TC) -> 48 MiB limit.
    limit = min(max(cap - 16 * 1024 * 1024, 32 * 1024 * 1024), 96 * 1024 * 1024)
    budget = int(limit * 0.80)
    return limit, budget


def _fused_heads_kernel(x_ref, w_ref, b_ref, o_ref, acc_ref):
    """Grid (N tiles, C tiles): f32-accumulated (TILE_N, CK) @ (CK, KP)."""
    kc = pl.program_id(1)

    @pl.when(kc == 0)
    def _():
        acc_ref[...] = jnp.zeros_like(acc_ref)

    acc_ref[...] += jnp.dot(x_ref[...], w_ref[...],
                            preferred_element_type=jnp.float32)

    @pl.when(kc == pl.num_programs(1) - 1)
    def _():
        o_ref[...] = acc_ref[...] + b_ref[...]


def _fused_linear_heads(x2, w_fused, b_fused, *, tile_n=None, c_tile=None):
    """x2: (N, C) bf16; w_fused: (C, KP) bf16; b_fused: (1, KP) f32 -> (N, KP) f32."""
    n, c = x2.shape
    kp = w_fused.shape[1]

    # ---- Reduction (C) tiling: keep row tiles large even for big C. --------
    if c_tile is not None:
        ck = int(c_tile)
    elif c <= 2048:
        ck = c
    else:
        ck = None
        for cand in (2048, 1024, 512, 256, 128):
            if c % cand == 0:
                ck = cand
                break
        if ck is None:
            ck = 512
    if c % ck != 0:  # rare: zero-pad the reduction axis (semantically neutral)
        c_pad = _round_up(c, ck)
        x2 = jnp.pad(x2, ((0, 0), (0, c_pad - c)))
        w_fused = jnp.pad(w_fused, ((0, c_pad - c), (0, 0)))
        c = c_pad
    c_tiles = c // ck

    vmem_limit, budget = _vmem_budget_bytes()

    # ---- ROI-row tile size. -------------------------------------------------
    # Resident: weight tile + bias are 2x-buffered by default even with a
    # constant/looping index_map -> count them at 2x.  Per row: double-buffered
    # bf16 x tile, double-buffered f32 out tile, f32 accumulator scratch.
    if tile_n is None:
        resident = 2 * 2 * ck * kp + 2 * 4 * kp
        per_row = 2 * 2 * ck + 2 * 4 * kp + 4 * kp
        tile_n = (budget - resident) // max(per_row, 1)
        tile_n = max(16, min(1024, tile_n))
    tile_n = max(16, (int(tile_n) // 16) * 16)            # bf16 sublane packing
    # Guarantee >=2 grid steps along N when N allows it (feeds both v7x TCs;
    # costs nothing on single-TC v5e/v6e).
    two_step_cap = max(16, _round_up((n + 1) // 2, 16))
    tile_n = min(tile_n, two_step_cap)

    n_tiles = pl.cdiv(n, tile_n)   # ragged final tile: padded reads, masked writes

    cost = pl.CostEstimate(
        flops=2 * n * c * kp,
        transcendentals=0,
        bytes_accessed=2 * n * c + 2 * c * kp + 4 * kp + 4 * n * kp,
    )

    return pl.pallas_call(
        _fused_heads_kernel,
        out_shape=jax.ShapeDtypeStruct((n, kp), jnp.float32),
        grid=(n_tiles, c_tiles),
        in_specs=[
            pl.BlockSpec((tile_n, ck), lambda i, kc: (i, kc)),   # streamed ROI rows
            pl.BlockSpec((ck, kp), lambda i, kc: (kc, 0)),       # fused bf16 weights
            pl.BlockSpec((1, kp), lambda i, kc: (0, 0)),         # fused f32 bias
        ],
        out_specs=pl.BlockSpec((tile_n, kp), lambda i, kc: (i, 0)),  # lane-dense logits
        scratch_shapes=[pltpu.VMEM((tile_n, kp), jnp.float32)],
        compiler_params=pltpu.CompilerParams(
            dimension_semantics=("parallel", "arbitrary"),
            vmem_limit_bytes=int(vmem_limit),
        ),
        cost_estimate=cost,
    )(x2, w_fused, b_fused)


def prepare_oicr_params(w_pt, b_pt):
    """One-time weight prep (hoist out of the per-call path).

    w_pt: (5, K, C) PyTorch-layout weights (cls, det, ref1, ref2, ref3);
    b_pt: (5, K) biases.  Returns (bf16 (C, KP) fused weights, f32 (1, KP)
    fused bias, K) with KP = round_up(5*K, 128) lanes.
    """
    num_heads, k, c = w_pt.shape
    assert num_heads == 5
    kp = _round_up(num_heads * k, 128)
    w_fused = jnp.transpose(w_pt, (2, 0, 1)).reshape(c, num_heads * k)
    b_fused = jnp.asarray(b_pt).reshape(1, num_heads * k)
    if kp != num_heads * k:
        w_fused = jnp.pad(w_fused, ((0, 0), (0, kp - num_heads * k)))
        b_fused = jnp.pad(b_fused, ((0, 0), (0, kp - num_heads * k)))
    return (w_fused.astype(jnp.bfloat16), b_fused.astype(jnp.float32), int(k))


def oicr_predictor_forward(x, proposal_counts, params, training=False,
                           tile_n=None, c_tile=None):
    """x: (N, C, H, W) or (N, C); proposal_counts: python ints summing to N;
    params = prepare_oicr_params(w_pt, b_pt)."""
    w_fused, b_fused, k = params

    # Adaptive avg-pool to 1x1 + flatten (XLA), emitted directly as bf16 so the
    # pooled intermediate and the kernel's dominant input stream are half-width.
    if x.ndim == 4:
        x2 = jnp.mean(x, axis=(2, 3))
    else:
        x2 = x
    x2 = x2.astype(jnp.bfloat16)

    fused_logits = _fused_linear_heads(x2, w_fused, b_fused,
                                       tile_n=tile_n, c_tile=c_tile)

    cls_l = fused_logits[:, 0 * k:1 * k]
    det_l = fused_logits[:, 1 * k:2 * k]
    r1 = fused_logits[:, 2 * k:3 * k]
    r2 = fused_logits[:, 3 * k:4 * k]
    r3 = fused_logits[:, 4 * k:5 * k]

    if training:
        return cls_l, det_l, [r1, r2, r3]

    # Eval epilogue: tiny O(N*K) ops in XLA.  The per-image det softmax is a
    # cross-row reduction over variable-length proposal groups, so it stays in
    # XLA.  The row-wise softmaxes could be fused into the kernel store, but
    # the win is only ~KP/(C+KP) of HBM traffic; kept in XLA for clarity.
    cls_l = jax.nn.softmax(cls_l, axis=1)
    r1 = jax.nn.softmax(r1, axis=1)
    r2 = jax.nn.softmax(r2, axis=1)
    r3 = jax.nn.softmax(r3, axis=1)

    pieces, off = [], 0
    for cnt in proposal_counts:
        cnt = int(cnt)
        if cnt > 0:
            pieces.append(jax.nn.softmax(det_l[off:off + cnt], axis=0))
        off += cnt
    det_out = jnp.concatenate(pieces, axis=0) if pieces else det_l[:0]

    return cls_l, det_out, [r1, r2, r3]


def _reference_forward(x, proposal_counts, w_pt, b_pt, training=False):
    """Pure-JAX f32 reference mirroring the PyTorch forward (weights (5, K, C))."""
    if x.ndim == 4:
        x2 = jnp.mean(x, axis=(2, 3))
    else:
        x2 = x
    logits = [x2 @ w_pt[i].T + b_pt[i] for i in range(5)]
    cls_l, det_l, r1, r2, r3 = logits
    if training:
        return cls_l, det_l, [r1, r2, r3]
    cls_l = jax.nn.softmax(cls_l, axis=1)
    pieces, off = [], 0
    for cnt in proposal_counts:
        pieces.append(jax.nn.softmax(det_l[off:off + cnt], axis=0))
        off += cnt
    det_l = jnp.concatenate(pieces, axis=0)
    r1 = jax.nn.softmax(r1, axis=1)
    r2 = jax.nn.softmax(r2, axis=1)
    r3 = jax.nn.softmax(r3, axis=1)
    return cls_l, det_l, [r1, r2, r3]


if __name__ == "__main__":
    key = jax.random.PRNGKey(0)
    k_x, k_w, k_b, k_x2, k_w2, k_b2 = jax.random.split(key, 6)

    # --- Config 1: NCHW input, ragged final N tile, single C tile. ----------
    in_channels, num_classes = 32, 16
    proposal_counts = [13, 11]              # N = 24 -> two 16-row tiles (ragged)
    n_rois = sum(proposal_counts)
    x = jax.random.normal(k_x, (n_rois, in_channels, 4, 4), dtype=jnp.float32)
    # nn.init.normal_(weight, std=0.001); small random bias to exercise the path.
    w_pt = jax.random.normal(k_w, (5, num_classes, in_channels), jnp.float32) * 0.001
    b_pt = jax.random.normal(k_b, (5, num_classes), jnp.float32) * 0.01
    params = prepare_oicr_params(w_pt, b_pt)

    cls_o, det_o, refs_o = oicr_predictor_forward(
        x, proposal_counts, params, training=False, tile_n=16)
    jax.block_until_ready((cls_o, det_o, refs_o))

    cls_r, det_r, refs_r = _reference_forward(x, proposal_counts, w_pt, b_pt, False)
    assert jnp.allclose(cls_o, cls_r, atol=2e-3), "cls mismatch"
    assert jnp.allclose(det_o, det_r, atol=2e-3), "det mismatch"
    for a, b in zip(refs_o, refs_r):
        assert jnp.allclose(a, b, atol=2e-3), "ref mismatch"

    # Training path (raw logits); bf16-streamed inputs -> loosened tolerance.
    cls_t, det_t, refs_t = oicr_predictor_forward(
        x, proposal_counts, params, training=True, tile_n=16)
    cls_tr, det_tr, refs_tr = _reference_forward(x, proposal_counts, w_pt, b_pt, True)
    jax.block_until_ready((cls_t, det_t, refs_t))
    assert jnp.allclose(cls_t, cls_tr, atol=5e-3, rtol=5e-2), "train cls mismatch"
    assert jnp.allclose(det_t, det_tr, atol=5e-3, rtol=5e-2), "train det mismatch"
    for a, b in zip(refs_t, refs_tr):
        assert jnp.allclose(a, b, atol=5e-3, rtol=5e-2), "train ref mismatch"

    # --- Config 2: pre-pooled 2-D input, multi-C-tile accumulator path. -----
    in_channels2, num_classes2 = 512, 21
    proposal_counts2 = [10, 7]              # N = 17 -> ragged final tile
    n2 = sum(proposal_counts2)
    x2d = jax.random.normal(k_x2, (n2, in_channels2), jnp.float32)
    w2 = jax.random.normal(k_w2, (5, num_classes2, in_channels2), jnp.float32) * 0.001
    b2 = jax.random.normal(k_b2, (5, num_classes2), jnp.float32) * 0.01
    params2 = prepare_oicr_params(w2, b2)

    cls2, det2, refs2 = oicr_predictor_forward(
        x2d, proposal_counts2, params2, training=False, c_tile=128)
    jax.block_until_ready((cls2, det2, refs2))
    cls2r, det2r, refs2r = _reference_forward(x2d, proposal_counts2, w2, b2, False)
    assert jnp.allclose(cls2, cls2r, atol=2e-3), "cfg2 cls mismatch"
    assert jnp.allclose(det2, det2r, atol=2e-3), "cfg2 det mismatch"
    for a, b in zip(refs2, refs2r):
        assert jnp.allclose(a, b, atol=2e-3), "cfg2 ref mismatch"

    print("KERNEL_OK")
</pallas_src>

<mosaic_0001>
module attributes {stable_mosaic.version = 11 : i64} {
  func.func @_fused_heads_kernel(%arg0: i32, %arg1: i32, %arg2: memref<16x32xbf16, #tpu.memory_space<vmem>>, %arg3: memref<32x128xbf16, #tpu.memory_space<vmem>>, %arg4: memref<1x128xf32, #tpu.memory_space<vmem>>, %arg5: memref<16x128xf32, #tpu.memory_space<vmem>>, %arg6: memref<16x128xf32, #tpu.memory_space<vmem>>) attributes {dimension_semantics = [#tpu.dimension_semantics<parallel>, #tpu.dimension_semantics<arbitrary>], iteration_bounds = array<i64: 2, 1>, scalar_prefetch = 0 : i64, scratch_operands = 1 : i64, tpu.core_type = #tpu.core_type<tc>, window_params = [{transform_indices = @transform_0, window_bounds = array<i64: 16, 32>}, {transform_indices = @transform_1, window_bounds = array<i64: 32, 128>}, {pipeline_mode = #tpu.pipeline_mode<synchronous>, transform_indices = @transform_2, window_bounds = array<i64: 1, 128>}, {transform_indices = @transform_3, window_bounds = array<i64: 16, 128>}]} {
    %c0_i32 = arith.constant 0 : i32
    %0 = arith.cmpi eq, %arg1, %c0_i32 : i32
    %1 = arith.extui %0 : i1 to i32
    %c0_i32_0 = arith.constant 0 : i32
    %2 = arith.cmpi ne, %1, %c0_i32_0 : i32
    scf.if %2 {
      %cst_10 = arith.constant 0.000000e+00 : f32
      %12 = vector.broadcast %cst_10 : f32 to vector<16x128xf32>
      %c0_11 = arith.constant 0 : index
      %c0_12 = arith.constant 0 : index
      %13 = vector.load %arg6[%c0_11, %c0_12] : memref<16x128xf32, #tpu.memory_space<vmem>>, vector<16x128xf32>
      tpu.vector_store %arg6[%c0_11, %c0_12], %12 {strides = array<i32>} : memref<16x128xf32, #tpu.memory_space<vmem>>, vector<16x128xf32>,
    } else {
    }
    %c0 = arith.constant 0 : index
    %c0_1 = arith.constant 0 : index
    %3 = vector.load %arg6[%c0, %c0_1] : memref<16x128xf32, #tpu.memory_space<vmem>>, vector<16x128xf32>
    %c0_2 = arith.constant 0 : index
    %c0_3 = arith.constant 0 : index
    %4 = vector.load %arg2[%c0_2, %c0_3] : memref<16x32xbf16, #tpu.memory_space<vmem>>, vector<16x32xbf16>
    %c0_4 = arith.constant 0 : index
    %c0_5 = arith.constant 0 : index
    %5 = vector.load %arg3[%c0_4, %c0_5] : memref<32x128xbf16, #tpu.memory_space<vmem>>, vector<32x128xbf16>
    %cst = arith.constant dense<0.000000e+00> : vector<16x128xf32>
    %6 = tpu.matmul %4, %5, %cst {dimension_numbers = #tpu.dot_dimension_numbers<[1], [0], [0], [1], [0, 0, 1, 1], [], []>} : vector<16x32xbf16>, vector<32x128xbf16>, vector<16x128xf32> -> vector<16x128xf32>
    %7 = arith.addf %3, %6 : vector<16x128xf32>
    %c0_6 = arith.constant 0 : index
    %c0_7 = arith.constant 0 : index
    %8 = vector.load %arg6[%c0_6, %c0_7] : memref<16x128xf32, #tpu.memory_space<vmem>>, vector<16x128xf32>
    tpu.vector_store %arg6[%c0_6, %c0_7], %7 {strides = array<i32>} : memref<16x128xf32, #tpu.memory_space<vmem>>, vector<16x128xf32>,
    %c0_i32_8 = arith.constant 0 : i32
    %9 = arith.cmpi eq, %arg1, %c0_i32_8 : i32
    %10 = arith.extui %9 : i1 to i32
    %c0_i32_9 = arith.constant 0 : i32
    %11 = arith.cmpi ne, %10, %c0_i32_9 : i32
    scf.if %11 {
      %c0_10 = arith.constant 0 : index
      %c0_11 = arith.constant 0 : index
      %12 = vector.load %arg6[%c0_10, %c0_11] : memref<16x128xf32, #tpu.memory_space<vmem>>, vector<16x128xf32>
      %c0_12 = arith.constant 0 : index
      %c0_13 = arith.constant 0 : index
      %13 = vector.load %arg4[%c0_12, %c0_13] : memref<1x128xf32, #tpu.memory_space<vmem>>, vector<1x128xf32>
      %14 = vector.broadcast %13 : vector<1x128xf32> to vector<16x128xf32>
      %15 = arith.addf %12, %14 : vector<16x128xf32>
      %c0_14 = arith.constant 0 : index
      %c0_15 = arith.constant 0 : index
      %16 = vector.load %arg5[%c0_14, %c0_15] : memref<16x128xf32, #tpu.memory_space<vmem>>, vector<16x128xf32>
      tpu.vector_store %arg5[%c0_14, %c0_15], %15 {strides = array<i32>} : memref<16x128xf32, #tpu.memory_space<vmem>>, vector<16x128xf32>,
    } else {
    }
    return
  }
  func.func @transform_0(%arg0: i32, %arg1: i32) -> (i32, i32) {
    %c0_i32 = arith.constant 0 : i32
    return %arg0, %arg1 : i32, i32
  }
  func.func @transform_1(%arg0: i32, %arg1: i32) -> (i32, i32) {
    %c0_i32 = arith.constant 0 : i32
    %c0_i32_0 = arith.constant 0 : i32
    return %arg1, %c0_i32 : i32, i32
  }
  func.func @transform_2(%arg0: i32, %arg1: i32) -> (i32, i32) {
    %c0_i32 = arith.constant 0 : i32
    %c0_i32_0 = arith.constant 0 : i32
    %c0_i32_1 = arith.constant 0 : i32
    return %c0_i32, %c0_i32_0 : i32, i32
  }
  func.func @transform_3(%arg0: i32, %arg1: i32) -> (i32, i32) {
    %c0_i32 = arith.constant 0 : i32
    %c0_i32_0 = arith.constant 0 : i32
    return %arg0, %c0_i32 : i32, i32
  }
}

</mosaic_0001>

<bundles_post_ra>
// kernel: tpu_custom_call.1
= control target key start
LH: loop header
LB: loop body
LE: loop exit
PB: predicated region body
PF: predicated region fallthrough
CT: control target
= control target key end

     0   :  { %8 = vsyncpa [#allocation4], 0  ;;  %s953_s0 = inlined_call_operand.hbm [shape: bf16[24,32], index: 0, kind: input, shape index: {}]   ;;  %s954_s1 = inlined_call_operand.hbm [shape: bf16[32,128], index: 1, kind: input, shape index: {}]   ;;  %s955_s2 = inlined_call_operand.vmem [shape: f32[1,128], index: 2, kind: input, shape index: {}]   ;;  %s956_s3 = inlined_call_operand.hbm [shape: f32[24,128], index: 3, kind: output, shape index: {}]  }
   0x1   :  { %10 = vsyncpa [#allocation4 + $0x1], 0 }
   0x2   :  { %11 = vsyncpa [#allocation7], 0 }
   0x3   :  { %12 = vsyncpa [#allocation5], 0 }
   0x4   :  { %14 = vsyncpa [#allocation5 + $0x1], 0  ;;  %s745_s12 = smov 0   ;;  %s747_s13 = smov 0  }
   0x5   :  { %s749_s14 = smov 0   ;;  %s751_s15 = smov 0  }
   0x6   :  { %s753_s16 = smov 0   ;;  %s755_s17 = smov 0  }
   0x7 LB: > { %s456_s18 = sadd.s32 4294967295, %s712_s17   ;;  %s457_s19 = sadd.s32 4294967294, %s712_s17   ;;  %s712_s17 = sphi %s755_s17, %s20_s17   ;;  %s708_s16 = sphi %s753_s16, %s971_s16   ;;  %s704_s15 = sphi %s751_s15, %s970_s15   ;;  %s700_s14 = sphi %s749_s14, %s969_s14   ;;  %s696_s13 = sphi %s747_s13, %s968_s13   ;;  %s692_s12 = sphi %s745_s12, %s967_s12  }
   0x8   : > { %s32_s20 = sadd.s32 1, %s708_s16  ;;  %s41_s21 = sadd.s32 1, %s700_s14 }
   0x9   : > { %p34_p0 = scmp.ge.s32.totalorder %s32_s20, 2  ;;  %p48_p1 = scmp.ne.s32.totalorder %s700_s14, %s696_s13 }
   0xa   : > { %p49_p2 = scmp.eq.s32.totalorder %s712_s17, 0  ;;  %p54_p3 = scmp.ne.s32.totalorder %s696_s13, %s692_s12 }
   0xb   : > { %s973_s20 = smov (%p34_p0, %s32_s20), 0  ;;  %p790_p5 = scmp.eq.s32.totalorder %s456_s18, 0 }
   0xc   : > { %p786_p4 = por %p49_p2, %p48_p1  ;;  %s36_s24 = ssub.s32 %s708_s16, %s973_s20 }
   0xd   : > { %p125_p6 = scmp.eq.s32.totalorder %s456_s18, 1  ;;  %p39_p7 = scmp.eq.s32.totalorder %s36_s24, 0 }
   0xe   : > { %p798_p8 = por %p790_p5, %p54_p3  ;;  %p131_p10 = scmp.eq.s32.totalorder %s457_s19, 1 }
   0xf   : > { %p802_p9 = por %p125_p6, %p48_p1  ;;  %p458_p12 = scmp.ge.s32.totalorder %s712_s17, 1 }
  0x10   : > { %s960_s25 = scalar_select %p798_p8, 1, 0 }
  0x11   : > { %s961_s26 = scalar_select %p802_p9, 1, 0 }
  0x12   : > { %s807_s27 = scalar_select %p39_p7, %s700_s14, %s41_s21  }
  0x13   : > { %p809_p11 = por %p131_p10, %p54_p3  ;;  %p138_p13 = scmp.lt.s32.totalorder %s712_s17, 3 }
  0x14   : > { %s714_s30 = smov [#allocation6]  }
  0x15   : > { %s962_s28 = scalar_select %p809_p11, 1, 0 }
  0x16   : > { %p815_p0 = pnand %p458_p12, %p138_p13  ;;  %s153_s4 = sshll.u32 %s714_s30, 4  ;;  %s154_s4 = int_to_ptr.vmem [resolvable:$true] %s153_s4 }
  0x17   : > { %s587_s5 = scalar_lea.vmem %s154_s4, 256  ;;  %p595_p11 = scmp.lt.s32.totalorder %s154_s4, %s154_s4 }
  0x18   : > { %p505_p1 = pneg %p815_p0  ;;  %p588_p3 = scmp.ne.s32.totalorder %s154_s4, %s587_s5 }
  0x19   : > { %p596_p9 = scmp.lt.s32.totalorder %s587_s5, %s587_s5 }
  0x1a   : > { %p506_p2 = pnand %p505_p1, %p790_p5 }
  0x1b   : > { %p597_p8 = por %p596_p9, %p595_p11 }
  0x1c   : > { %p578_p6 = pneg %p506_p2 }
  0x1e   : > { %p590_p7 = pnand %p588_p3, %p578_p6 }
  0x20   : > { %p591_p10 = pneg %p590_p7 }
  0x22   : > { %p598_p12 = pnand %p597_p8, %p591_p10 }
  0x24   : > { %601 = shalt.err (!%p598_p12)
}
  0x25   : > { %s715_s6 = smov 64   ;;  %s716_s7 = smov 4  }
  0x26   : > { %508 = dma.hbm_to_vmem [thread:$0]  (!%p506_p2), %s954_s1, 256, %s154_s4, [#allocation7], %s715_s6, %s715_s6, %s716_s7  }
  0x27   : > { %p460_p13 = scmp.ge.s32.totalorder %s712_s17, 2 }
  0x29   : > { %166 = sbr.rel (%p460_p13) target bundleno = 78 (0x4e), region = 24 }
  0x2e   : > { %169 = sbr.rel (!%p786_p4) target bundleno = 78 (0x4e), region = 28  ;;  %s170_s10 = sand.u32 (%p786_p4), 1, %s700_s14  }
  0x2f   : > { %s462_s11 = sshll.u32 (%p786_p4), %s708_s16, 1  ;;  %s461_s18 = sshll.u32 (%p786_p4), %s170_s10, 3 }
  0x30   : > { %s176_s19 = ssub.s32 (%p786_p4), 3, %s462_s11  ;;  %s836_s30 = scalar_lea.sflag (%p786_p4), [#allocation4], %s170_s10 }
  0x31   : > { %p177_p8 = scmp.lt.s32.totalorder (%p786_p4), %s176_s19, 2  ;;  %s174_s4 = scalar_lea.vmem (%p786_p4), [#allocation3], %s461_s18 }
  0x33   : > { %s975_s19 = smov (!%p177_p8, %s176_s19), 2 }
  0x34   : > { %s833_s21 = sshll.u32 %s975_s19, 6 }
  0x35   : > { %s181_s24 = ssub.s32 128, %s833_s21 }
  0x36   : > { %182 = vsyncadd %s836_s30, %s181_s24  ;;  %p464_p4 = scmp.ne.s32.totalorder %s833_s21, 0  ;;  %s486_s22 = sshll.u32 %s708_s16, 7 }
  0x37   : > { %s844_s7 = scalar_lea.hbm %s953_s0, %s486_s22  ;;  %s188_s8 = sshll.u32 %s174_s4, 4  ;;  %s846_s8 = int_to_ptr.vmem [resolvable:$true] %s188_s8 }
  0x38   : > { %s602_s9 = scalar_lea.hbm %s844_s7, %s833_s21  ;;  %s606_s18 = scalar_lea.hbm %s953_s0, 192 }
  0x39   : > { %p603_p9 = scmp.ne.s32.totalorder %s844_s7, %s602_s9  ;;  %p608_p2 = scmp.lt.s32.totalorder %s606_s18, %s602_s9 }
  0x3b   : > { %p604_p11 = pnand %p603_p9, %p464_p4 }
  0x3d   : > { %p605_p1 = pneg %p604_p11 }
  0x3f   : > { %p610_p6 = pnand %p608_p2, %p605_p1 }
  0x41   : > { %613 = shalt.err (!%p610_p6)
}
  0x42   : > { %s614_s19 = scalar_lea.vmem %s846_s8, %s833_s21  ;;  %s717_s24 = smov [#allocation3]  }
  0x43   : > { %p615_p3 = scmp.ne.s32.totalorder %s846_s8, %s614_s19  ;;  %s618_s4 = sshll.u32 %s717_s24, 4  ;;  %s619_s4 = int_to_ptr.vmem [resolvable:$false] %s618_s4 }
  0x44   : > { %s620_s22 = scalar_lea.vmem %s619_s4, 256  ;;  %p621_p12 = scmp.lt.s32.totalorder %s846_s8, %s619_s4 }
  0x45   : > { %p616_p7 = pnand %p615_p3, %p464_p4  ;;  %p622_p8 = scmp.lt.s32.totalorder %s620_s22, %s614_s19 }
  0x47   : > { %p617_p10 = pneg %p616_p7  ;;  %p623_p9 = por %p622_p8, %p621_p12 }
  0x49   : > { %p624_p11 = pnand %p623_p9, %p617_p10 }
  0x4b   : > { %627 = shalt.err (!%p624_p11)
}
  0x4c   : > { %s718_s5 = smov 64   ;;  %s719_s6 = smov 4  }
  0x4d   : > { %194 = dma.hbm_to_vmem [thread:$0]  (%p464_p4), %s844_s7, %s833_s21, %s846_s8, %s836_s30, %s718_s5, %s718_s5, %s719_s6  }
  0x4e PF: > { %200 = sbr.rel (%p815_p0) target bundleno = 322 (0x142), region = 32  ;;  %s871_s9 = sand.u32 (!%p815_p0), 1, %s696_s13  }
  0x4f   : > { %s469_s10 = sshll.u32 (!%p815_p0), %s871_s9, 3  ;;  %s203_s11 = scalar_lea.sflag (!%p815_p0), [#allocation4], %s871_s9 }
  0x50   : > { %s206_s18 = scalar_lea.vmem (!%p815_p0), [#allocation3], %s469_s10  ;;  %p964_p1 = scmp.ne.s32.totalorder (!%p815_p0), %s960_s25, 0 }
  0x53   : > { %679 = dma.done.wait (%p964_p1), %s203_s11, 128  }
  0x54   : > { %681 = vsyncadd (%p964_p1), %s203_s11, 4294967168 }
  0x55   : > { %683 = dma.done.wait (%p790_p5), [#allocation7], 256  }
  0x56   : > { %685 = vsyncadd (%p790_p5), [#allocation7], 4294967040  ;;  %v720_v0 = vmov 0.0   ;;  %vm721_vm0 = vmmov 0   ;;  %v573_v1 = vld [vmem:[#allocation6 + $0x8] sm:$0xff]   ;;  %v574_v2 = vld [vmem:[#allocation6] sm:$0xff]  }
  0x57   : > { %491 = vmatprep.subr.bf16.mxu0 %v720_v0  ;;  %495 = vmatprep.mubr.msk.bf16.mxu0 %vm721_vm0, %v720_v0  ;;  %v575_v3 = vld [vmem:[%s206_s18] sm:$0xff]   ;;  %vm276_vm1 = vcmask 261120   ;;  %s471_s25 = sshll.u32 %s871_s9, 4  ;;  %s342_s30 = scalar_lea.sflag [#allocation5], %s871_s9 }
  0x58   : > { %492 = vmatpush3.bf16.msra.mxu0 %v573_v1  ;;  %v476_v4 = vld [vmem:[%s955_s2] ss:$0 sm:$0xff]  ;;  %s232_s23 = scalar_lea.vmem [#allocation8], %s471_s25  ;;  %p965_p5 = scmp.ne.s32.totalorder %s961_s26, 0 }
  0x59   : > { %493 = vmatprep.subr.bf16.mxu0 %v720_v0  ;;  %s478_s7 = sshll.u32 (%p965_p5), %s704_s15, 1 }
  0x5a   : > { %s350_s8 = ssub.s32 (%p965_p5), 3, %s478_s7 }
  0x5b   : > { %p351_p0 = scmp.lt.s32.totalorder (%p965_p5), %s350_s8, 2 }
  0x5c   : > { %494 = vmatpush3.bf16.msra.mxu0 %v574_v2 }
  0x5f   : > { %496 = vmatmul.mubr.msk.bf16.vlgmr.msra.gmra.mxu0 %vm276_vm1, %v575_v3 }
 0x11f   : > { %v314_v5 = vpop.f32.mrf.mxu0 }
 0x120   : > { %v337_v6 = vadd.f32 %v476_v4, %v314_v5 }
 0x121   : > { %v497_v7 = vpop.f32.mrf.mxu0 }
 0x122   : > { %339 = vst [vmem:[%s232_s23] sm:$0xff] %v337_v6  ;;  %348 = sbr.rel (!%p965_p5) target bundleno = 322 (0x142), region = 52 }
 0x123   : > { %v317_v8 = vpop.f32.mrf.mxu0 }
 0x124   : > { %v338_v9 = vadd.f32 %v476_v4, %v317_v8 }
 0x125   : > { %v498_v10 = vpop.f32.mrf.mxu0 }
 0x126   : > { %340 = vst [vmem:[%s232_s23 + $0x8] sm:$0xff] %v338_v9 }
 0x127   : > { %s977_s8 = smov (!%p351_p0, %s350_s8), 2 }
 0x128   : > { %s891_s19 = sshll.u32 %s977_s8, 7 }
 0x129   : > { %s355_s24 = ssub.s32 256, %s891_s19 }
 0x12a   : > { %356 = vsyncadd %s342_s30, %s355_s24  ;;  %p480_p4 = scmp.ne.s32.totalorder %s891_s19, 0  ;;  %s487_s4 = sshll.u32 %s704_s15, 8 }
 0x12b   : > { %s901_s5 = scalar_lea.hbm %s956_s3, %s487_s4  ;;  %s361_s6 = sshll.u32 %s232_s23, 4  ;;  %s903_s6 = int_to_ptr.vmem [resolvable:$true] %s361_s6 }
 0x12c   : > { %s628_s10 = scalar_lea.vmem %s903_s6, %s891_s19  ;;  %s722_s11 = smov [#allocation8]  }
 0x12d   : > { %p629_p2 = scmp.ne.s32.totalorder %s903_s6, %s628_s10  ;;  %s632_s18 = sshll.u32 %s722_s11, 4  ;;  %s633_s18 = int_to_ptr.vmem [resolvable:$false] %s632_s18 }
 0x12e   : > { %s634_s15 = scalar_lea.vmem %s633_s18, 512  ;;  %p635_p7 = scmp.lt.s32.totalorder %s903_s6, %s633_s18 }
 0x12f   : > { %p630_p6 = pnand %p629_p2, %p480_p4  ;;  %p636_p10 = scmp.lt.s32.totalorder %s634_s15, %s628_s10 }
 0x131   : > { %p631_p3 = pneg %p630_p6  ;;  %p637_p12 = por %p636_p10, %p635_p7 }
 0x133   : > { %p638_p8 = pnand %p637_p12, %p631_p3 }
 0x135   : > { %641 = shalt.err (!%p638_p8)
}
 0x136   : > { %s642_s25 = scalar_lea.hbm %s901_s5, %s891_s19  ;;  %s646_s23 = scalar_lea.hbm %s956_s3, 384 }
 0x137   : > { %p643_p9 = scmp.ne.s32.totalorder %s901_s5, %s642_s25  ;;  %p647_p5 = scmp.lt.s32.totalorder %s901_s5, %s956_s3 }
 0x138   : > { %p648_p0 = scmp.lt.s32.totalorder %s646_s23, %s642_s25 }
 0x139   : > { %p644_p11 = pnand %p643_p9, %p480_p4 }
 0x13a   : > { %p649_p2 = por %p648_p0, %p647_p5 }
 0x13b   : > { %p645_p1 = pneg %p644_p11 }
 0x13d   : > { %p650_p6 = pnand %p649_p2, %p645_p1 }
 0x13f   : > { %653 = shalt.err (!%p650_p6)
}
 0x140   : > { %s723_s24 = smov 128   ;;  %s724_s4 = smov 8  }
 0x141   : > { %367 = dma.vmem_to_hbm [thread:$0]  (%p480_p4), %s903_s6, %s891_s19, %s901_s5, %s342_s30, %s723_s24, %s723_s24, %s724_s4  }
 0x142 PF: > { %s376_s26 = sand.u32 1, %s692_s12   ;;  %p966_p3 = scmp.ne.s32.totalorder %s962_s28, 0 }
 0x143   : > { %s377_s22 = scalar_lea.sflag [#allocation5], %s376_s26 }
 0x144   : > { %p510_p7 = pnand %p460_p13, %p966_p3 }
 0x146   : > { %p511_p10 = pneg %p510_p7 }
 0x148   : > { %687 = dma.done.wait (%p511_p10), %s377_s22, 256  }
 0x149   : > { %689 = vsyncadd (%p511_p10), %s377_s22, 4294967040  ;;  %s20_s17 = sadd.s32 1, %s712_s17   ;;  %s967_s12 = smov %s696_s13 }
 0x14a   : > { %p17_p12 = scmp.ge.s32.totalorder %s20_s17, 4   ;;  %s968_s13 = smov %s700_s14 }
 0x14b   : > { %s969_s14 = smov %s807_s27  ;;  %s970_s15 = smov %s708_s16 }
 0x14c   : > { %s971_s16 = smov %s973_s20  ;;  %19 = sbr.rel (!%p17_p12) target bundleno = 7 (0x7), region = 90 }
 0x151   :  { %382 = vsyncpa [#allocation4], 1 }
 0x152   :  { %384 = vsyncpa [#allocation4 + $0x1], 1 }
 0x153   :  { %385 = vsyncpa [#allocation7], 1 }
 0x154   :  { %386 = vsyncpa [#allocation5], 1 }
 0x155   :  { %388 = vsyncpa [#allocation5 + $0x1], 1 }

</bundles_post_ra>
